<compile_context>
chip_gen: v6e
topology: v6e:2x2x1
jax: 0.10.0
libtpu: 0.0.40
codegen_flags: <defaults>
</compile_context>

<pallas_src>
import functools

import jax
import jax.numpy as jnp
from jax.experimental import pallas as pl
from jax.experimental.pallas import tpu as pltpu


def _round_up(x, m):
    return (x + m - 1) // m * m


def _cdiv(a, b):
    return -(-a // b)


def _vmem_capacity_bytes():
    try:
        return int(pltpu.get_tpu_info().vmem_capacity_bytes)
    except Exception:
        return 128 * 1024 * 1024   # v5e / v6e default


def _rev_seq_kernel(resident_w, carry_in_out, mm_dtype,
                    x1_ref, x2_ref,
                    wf1_ref, bf1_ref, wf2_ref, bf2_ref,
                    wg1_ref, bg1_ref, wg2_ref, bg2_ref,
                    y1_ref, y2_ref, *scratch):
    """Fused ReversibleSequence body.  grid = (token_tiles, n_blocks).

    NOTE: the activation carry is resident across the block axis (grid axis 1),
    which therefore MUST stay the innermost grid axis and "arbitrary".  The
    token axis (axis 0) is "parallel" (each core keeps its own carry).
    """
    b = pl.program_id(1)
    widx = b if resident_w else 0   # resident: index stacked weights by block id

    if carry_in_out:
        # f32 activations: the resident output tiles ARE the carry (no scratch).
        c1_ref, c2_ref = y1_ref, y2_ref
    else:
        # bf16/other activations: carry the residual stream in f32 scratch.
        c1_ref, c2_ref = scratch

    @pl.when(b == 0)
    def _():
        c1_ref[...] = x1_ref[...].astype(c1_ref.dtype)
        c2_ref[...] = x2_ref[...].astype(c2_ref.dtype)

    x1 = c1_ref[...].astype(jnp.float32)
    x2 = c2_ref[...].astype(jnp.float32)

    def mlp(z, w1_ref, b1_ref, w2_ref, b2_ref):
        # MXU matmuls in mm_dtype (bf16 by default), f32 accumulation;
        # bias add and ReLU stay in f32 on the VPU.
        hh = jnp.dot(z.astype(mm_dtype), w1_ref[widx],
                     preferred_element_type=jnp.float32) + b1_ref[widx]
        hh = jnp.maximum(hh, 0.0)
        return (jnp.dot(hh.astype(mm_dtype), w2_ref[widx],
                        preferred_element_type=jnp.float32) + b2_ref[widx])

    y1 = x1 + mlp(x2, wf1_ref, bf1_ref, wf2_ref, bf2_ref)
    y2 = x2 + mlp(y1, wg1_ref, bg1_ref, wg2_ref, bg2_ref)

    c1_ref[...] = y1.astype(c1_ref.dtype)
    c2_ref[...] = y2.astype(c2_ref.dtype)

    if not carry_in_out:
        # Lane-dense half-stores after the last block only (no concat temp).
        @pl.when(b == pl.num_programs(1) - 1)
        def _():
            y1_ref[...] = y1.astype(y1_ref.dtype)
            y2_ref[...] = y2.astype(y2_ref.dtype)


def reversible_sequence(x, blocks_params, *, tile_n=None,
                        matmul_dtype=jnp.bfloat16, weights_resident=None):
    """Forward pass of ReversibleSequence, fully fused into one pallas_call.

    x: [N, 2*H]  (tokens x features), split along dim 1.
    blocks_params: list of per-block parameter dicts
                   (wf1, bf1, wf2, bf2, wg1, bg1, wg2, bg2).
    matmul_dtype: operand dtype for the MXU matmuls (bf16 default, f32 exact).
    weights_resident: None = auto (resident if the stack fits VMEM budget).
    """
    n, two_h = x.shape
    assert two_h % 2 == 0, "feature dim must be splittable in two"
    h = two_h // 2
    n_blocks = len(blocks_params)
    if n_blocks == 0:           # empty sequence == identity (PyTorch loop body never runs)
        return x
    ffdim = blocks_params[0]["wf1"].shape[1]
    dtype = x.dtype
    act_itemsize = jnp.dtype(dtype).itemsize
    mm_dtype = jnp.dtype(matmul_dtype)
    w_itemsize = mm_dtype.itemsize

    # Lane-align model dims (avoids masked MXU / partial-lane ops for small H/F).
    h_pad = _round_up(h, 128)
    f_pad = _round_up(ffdim, 128)

    # ---- stack + zero-pad per-block parameters ------------------------------
    def stack_pad(name, rows, cols, cast_dtype):
        w = jnp.stack([p[name] for p in blocks_params], axis=0)
        r, c = w.shape[1], w.shape[2]
        if (r, c) != (rows, cols):
            w = jnp.pad(w, ((0, 0), (0, rows - r), (0, cols - c)))
        return w.astype(cast_dtype)

    wf1 = stack_pad("wf1", h_pad, f_pad, mm_dtype)   # (B, Hp, Fp)
    wf2 = stack_pad("wf2", f_pad, h_pad, mm_dtype)   # (B, Fp, Hp)
    wg1 = stack_pad("wg1", h_pad, f_pad, mm_dtype)
    wg2 = stack_pad("wg2", f_pad, h_pad, mm_dtype)
    bf1 = stack_pad("bf1", 1, f_pad, jnp.float32)    # (B, 1, Fp) — biases stay f32
    bf2 = stack_pad("bf2", 1, h_pad, jnp.float32)
    bg1 = stack_pad("bg1", 1, f_pad, jnp.float32)
    bg2 = stack_pad("bg2", 1, h_pad, jnp.float32)

    per_block_w_bytes = 4 * h_pad * f_pad * w_itemsize + 2 * (h_pad + f_pad) * 4
    total_w_bytes = n_blocks * per_block_w_bytes

    # ---- per-generation VMEM budget (v7x 64 MiB needs headroom) --------------
    vmem_capacity = _vmem_capacity_bytes()
    vmem_cap = vmem_capacity * 3 // 4          # ~48 MiB v7x, ~96 MiB v5e/v6e

    if weights_resident is None:
        weights_resident = 2 * total_w_bytes <= min(24 * 1024 * 1024, vmem_cap // 2)
    carry_in_out = (dtype == jnp.float32)

    # ---- token tile sizing ----------------------------------------------------
    w_vmem = 2 * (total_w_bytes if weights_resident else per_block_w_bytes)
    per_row = 4 * 2 * h_pad * act_itemsize            # x1,x2,y1,y2 double-buffered
    per_row += (2 * h_pad + f_pad) * 4                # live f32 temporaries
    if not carry_in_out:
        per_row += 2 * h_pad * 4                      # f32 scratch carry
    budget = max(vmem_cap - w_vmem - (4 << 20), 8 * per_row)
    max_tile = max(8, (budget // per_row) // 8 * 8)

    if tile_n is None:
        tile_n = 2048 if vmem_capacity >= (96 << 20) else 1024
    tile = min(_round_up(tile_n, 8), max_tile)
    if n > 8:
        # Guarantee >= 2 token tiles so the "parallel" axis feeds both v7x cores.
        tile = min(tile, _round_up(_cdiv(n, 2), 8))
    tile = max(tile, 8)
    num_tiles = _cdiv(n, tile)
    tile = _round_up(_cdiv(n, num_tiles), 8)          # balance remainder evenly
    n_pad = num_tiles * tile

    # ---- activation packing: two separate lane-dense [N, Hp] halves ----------
    x1 = x[:, :h]
    x2 = x[:, h:]
    pad_feat = h_pad - h
    pad_tok = n_pad - n
    if pad_feat or pad_tok:
        x1 = jnp.pad(x1, ((0, pad_tok), (0, pad_feat)))
        x2 = jnp.pad(x2, ((0, pad_tok), (0, pad_feat)))

    grid = (num_tiles, n_blocks)
    act_spec = pl.BlockSpec((tile, h_pad), lambda i, b: (i, 0))

    if weights_resident:
        # Whole stacked weights fetched once per kernel call (constant index).
        w_hf = pl.BlockSpec((n_blocks, h_pad, f_pad), lambda i, b: (0, 0, 0))
        w_fh = pl.BlockSpec((n_blocks, f_pad, h_pad), lambda i, b: (0, 0, 0))
        b_f = pl.BlockSpec((n_blocks, 1, f_pad), lambda i, b: (0, 0, 0))
        b_h = pl.BlockSpec((n_blocks, 1, h_pad), lambda i, b: (0, 0, 0))
    else:
        # Streamed per block (fallback for very large parameter stacks).
        w_hf = pl.BlockSpec((1, h_pad, f_pad), lambda i, b: (b, 0, 0))
        w_fh = pl.BlockSpec((1, f_pad, h_pad), lambda i, b: (b, 0, 0))
        b_f = pl.BlockSpec((1, 1, f_pad), lambda i, b: (b, 0, 0))
        b_h = pl.BlockSpec((1, 1, h_pad), lambda i, b: (b, 0, 0))

    scratch_shapes = []
    if not carry_in_out:
        scratch_shapes = [pltpu.VMEM((tile, h_pad), jnp.float32),
                          pltpu.VMEM((tile, h_pad), jnp.float32)]

    # Cost hint: real HBM traffic (activations once; weights once if resident,
    # per token tile if streamed).
    act_bytes = 4 * n_pad * h_pad * act_itemsize
    w_bytes = (total_w_bytes if weights_resident
               else num_tiles * n_blocks * per_block_w_bytes)
    cost = pl.CostEstimate(flops=8 * n_pad * n_blocks * h_pad * f_pad,
                           transcendentals=0,
                           bytes_accessed=act_bytes + w_bytes)

    vmem_est = w_vmem + per_row * tile
    vmem_limit = min(vmem_cap, max(vmem_est * 3 // 2, 32 * 1024 * 1024))

    kernel = functools.partial(_rev_seq_kernel, weights_resident, carry_in_out,
                               mm_dtype)
    y1_p, y2_p = pl.pallas_call(
        kernel,
        grid=grid,
        in_specs=[act_spec, act_spec,
                  w_hf, b_f, w_fh, b_h,      # f-block params
                  w_hf, b_f, w_fh, b_h],     # g-block params
        out_specs=[act_spec, act_spec],
        out_shape=[jax.ShapeDtypeStruct((n_pad, h_pad), dtype),
                   jax.ShapeDtypeStruct((n_pad, h_pad), dtype)],
        scratch_shapes=scratch_shapes,
        compiler_params=pltpu.CompilerParams(
            # Axis 1 (blocks) must stay innermost + "arbitrary": the carry is
            # resident across it.  Axis 0 (tokens) is "parallel" (megacore).
            dimension_semantics=("parallel", "arbitrary"),
            vmem_limit_bytes=int(vmem_limit)),
        cost_estimate=cost,
    )(x1, x2, wf1, bf1, wf2, bf2, wg1, bg1, wg2, bg2)

    return jnp.concatenate([y1_p[:n, :h], y2_p[:n, :h]], axis=1)


def reversible_sequence_reference(x, blocks_params, matmul_dtype=jnp.float32):
    """Pure-JAX reference (matmul_dtype mirrors the kernel's MXU precision)."""
    n, two_h = x.shape
    h = two_h // 2
    x1 = x[:, :h].astype(jnp.float32)
    x2 = x[:, h:].astype(jnp.float32)

    def mlp(z, w1, b1, w2, b2):
        hh = jnp.dot(z.astype(matmul_dtype), w1.astype(matmul_dtype),
                     preferred_element_type=jnp.float32) + b1
        hh = jnp.maximum(hh, 0.0)
        return jnp.dot(hh.astype(matmul_dtype), w2.astype(matmul_dtype),
                       preferred_element_type=jnp.float32) + b2

    for p in blocks_params:
        y1 = x1 + mlp(x2, p["wf1"], p["bf1"], p["wf2"], p["bf2"])
        y2 = x2 + mlp(y1, p["wg1"], p["bg1"], p["wg2"], p["bg2"])
        x1, x2 = y1, y2
    return jnp.concatenate([x1, x2], axis=1).astype(x.dtype)


def init_block_params(key, hidden, ffdim):
    ks = jax.random.split(key, 4)
    scale_in = 1.0 / jnp.sqrt(hidden)
    scale_ff = 1.0 / jnp.sqrt(ffdim)
    return {
        "wf1": jax.random.normal(ks[0], (hidden, ffdim), jnp.float32) * scale_in,
        "bf1": jnp.zeros((1, ffdim), jnp.float32),
        "wf2": jax.random.normal(ks[1], (ffdim, hidden), jnp.float32) * scale_ff,
        "bf2": jnp.zeros((1, hidden), jnp.float32),
        "wg1": jax.random.normal(ks[2], (hidden, ffdim), jnp.float32) * scale_in,
        "bg1": jnp.zeros((1, ffdim), jnp.float32),
        "wg2": jax.random.normal(ks[3], (ffdim, hidden), jnp.float32) * scale_ff,
        "bg2": jnp.zeros((1, hidden), jnp.float32),
    }


if __name__ == "__main__":
    # Small deterministic shapes: batch=2, seq=8 -> N = 16 tokens, hidden=32,
    # so the reversible-sequence input has 2*hidden = 64 features.
    batch, seq, hidden, ffdim = 2, 8, 32, 64
    n_blocks = 3
    N = batch * seq

    key = jax.random.PRNGKey(0)
    kx, kp = jax.random.split(key)
    x = jax.random.normal(kx, (N, 2 * hidden), jnp.float32)

    block_keys = jax.random.split(kp, n_blocks)
    blocks_params = [init_block_params(k, hidden, ffdim) for k in block_keys]

    ref_f32 = reversible_sequence_reference(x, blocks_params,
                                            matmul_dtype=jnp.float32)

    # 1) Exact-precision path (f32 matmuls, auto/resident weights): tight check.
    run_f32 = jax.jit(functools.partial(reversible_sequence,
                                        matmul_dtype=jnp.float32))
    out_f32 = jax.block_until_ready(run_f32(x, blocks_params))
    assert out_f32.shape == (N, 2 * hidden)
    assert jnp.allclose(out_f32, ref_f32, atol=1e-4, rtol=1e-4), "f32 mismatch"

    # 2) Exact-precision path with the streamed-weights fallback exercised.
    run_f32_s = jax.jit(functools.partial(reversible_sequence,
                                          matmul_dtype=jnp.float32,
                                          weights_resident=False))
    out_f32_s = jax.block_until_ready(run_f32_s(x, blocks_params))
    assert jnp.allclose(out_f32_s, ref_f32, atol=1e-4, rtol=1e-4), "streamed mismatch"

    # 3) Default high-throughput path: bf16 MXU matmuls, f32 accumulate/carry.
    run_bf16 = jax.jit(reversible_sequence)
    out_bf16 = jax.block_until_ready(run_bf16(x, blocks_params))
    ref_bf16 = reversible_sequence_reference(x, blocks_params,
                                             matmul_dtype=jnp.bfloat16)
    assert jnp.allclose(out_bf16, ref_bf16, atol=5e-3, rtol=5e-3), "bf16 mismatch"
    assert jnp.allclose(out_bf16, ref_f32, atol=1e-1, rtol=1e-1), "bf16 drift vs f32"

    # 4) bf16 activations exercise the f32-scratch-carry path.
    x_b = x.astype(jnp.bfloat16)
    out_b = jax.block_until_ready(jax.jit(reversible_sequence)(x_b, blocks_params))
    ref_b = reversible_sequence_reference(x_b, blocks_params,
                                          matmul_dtype=jnp.bfloat16)
    assert out_b.dtype == jnp.bfloat16
    assert jnp.allclose(out_b.astype(jnp.float32), ref_b.astype(jnp.float32),
                        atol=1e-1, rtol=1e-1), "bf16-activation mismatch"

    print("KERNEL_OK")
</pallas_src>

<mosaic_0001>
module attributes {stable_mosaic.version = 11 : i64} {
  func.func @_rev_seq_kernel(%arg0: i32, %arg1: i32, %arg2: memref<8x128xf32, #tpu.memory_space<vmem>>, %arg3: memref<8x128xf32, #tpu.memory_space<vmem>>, %arg4: memref<3x128x128xf32, #tpu.memory_space<vmem>>, %arg5: memref<3x1x128xf32, #tpu.memory_space<vmem>>, %arg6: memref<3x128x128xf32, #tpu.memory_space<vmem>>, %arg7: memref<3x1x128xf32, #tpu.memory_space<vmem>>, %arg8: memref<3x128x128xf32, #tpu.memory_space<vmem>>, %arg9: memref<3x1x128xf32, #tpu.memory_space<vmem>>, %arg10: memref<3x128x128xf32, #tpu.memory_space<vmem>>, %arg11: memref<3x1x128xf32, #tpu.memory_space<vmem>>, %arg12: memref<8x128xf32, #tpu.memory_space<vmem>>, %arg13: memref<8x128xf32, #tpu.memory_space<vmem>>) attributes {dimension_semantics = [#tpu.dimension_semantics<parallel>, #tpu.dimension_semantics<arbitrary>], iteration_bounds = array<i64: 2, 3>, scalar_prefetch = 0 : i64, scratch_operands = 0 : i64, tpu.core_type = #tpu.core_type<tc>, window_params = [{transform_indices = @transform_0, window_bounds = array<i64: 8, 128>}, {transform_indices = @transform_1, window_bounds = array<i64: 8, 128>}, {pipeline_mode = #tpu.pipeline_mode<synchronous>, transform_indices = @transform_2, window_bounds = array<i64: 3, 128, 128>}, {pipeline_mode = #tpu.pipeline_mode<synchronous>, transform_indices = @transform_3, window_bounds = array<i64: 3, 1, 128>}, {pipeline_mode = #tpu.pipeline_mode<synchronous>, transform_indices = @transform_4, window_bounds = array<i64: 3, 128, 128>}, {pipeline_mode = #tpu.pipeline_mode<synchronous>, transform_indices = @transform_5, window_bounds = array<i64: 3, 1, 128>}, {pipeline_mode = #tpu.pipeline_mode<synchronous>, transform_indices = @transform_6, window_bounds = array<i64: 3, 128, 128>}, {pipeline_mode = #tpu.pipeline_mode<synchronous>, transform_indices = @transform_7, window_bounds = array<i64: 3, 1, 128>}, {pipeline_mode = #tpu.pipeline_mode<synchronous>, transform_indices = @transform_8, window_bounds = array<i64: 3, 128, 128>}, {pipeline_mode = #tpu.pipeline_mode<synchronous>, transform_indices = @transform_9, window_bounds = array<i64: 3, 1, 128>}, {transform_indices = @transform_10, window_bounds = array<i64: 8, 128>}, {transform_indices = @transform_11, window_bounds = array<i64: 8, 128>}]} {
    %c0_i32 = arith.constant 0 : i32
    %0 = arith.cmpi eq, %arg1, %c0_i32 : i32
    %1 = arith.extui %0 : i1 to i32
    %c0_i32_0 = arith.constant 0 : i32
    %2 = arith.cmpi ne, %1, %c0_i32_0 : i32
    scf.if %2 {
      %c0_29 = arith.constant 0 : index
      %c0_30 = arith.constant 0 : index
      %49 = vector.load %arg2[%c0_29, %c0_30] : memref<8x128xf32, #tpu.memory_space<vmem>>, vector<8x128xf32>
      %c0_31 = arith.constant 0 : index
      %c0_32 = arith.constant 0 : index
      %50 = vector.load %arg12[%c0_31, %c0_32] : memref<8x128xf32, #tpu.memory_space<vmem>>, vector<8x128xf32>
      tpu.vector_store %arg12[%c0_31, %c0_32], %49 {strides = array<i32>} : memref<8x128xf32, #tpu.memory_space<vmem>>, vector<8x128xf32>,
      %c0_33 = arith.constant 0 : index
      %c0_34 = arith.constant 0 : index
      %51 = vector.load %arg3[%c0_33, %c0_34] : memref<8x128xf32, #tpu.memory_space<vmem>>, vector<8x128xf32>
      %c0_35 = arith.constant 0 : index
      %c0_36 = arith.constant 0 : index
      %52 = vector.load %arg13[%c0_35, %c0_36] : memref<8x128xf32, #tpu.memory_space<vmem>>, vector<8x128xf32>
      tpu.vector_store %arg13[%c0_35, %c0_36], %51 {strides = array<i32>} : memref<8x128xf32, #tpu.memory_space<vmem>>, vector<8x128xf32>,
    } else {
    }
    %c0 = arith.constant 0 : index
    %c0_1 = arith.constant 0 : index
    %3 = vector.load %arg12[%c0, %c0_1] : memref<8x128xf32, #tpu.memory_space<vmem>>, vector<8x128xf32>
    %c0_2 = arith.constant 0 : index
    %c0_3 = arith.constant 0 : index
    %4 = vector.load %arg13[%c0_2, %c0_3] : memref<8x128xf32, #tpu.memory_space<vmem>>, vector<8x128xf32>
    %5 = arith.index_cast %arg1 : i32 to index
    %c0_4 = arith.constant 0 : index
    %c0_5 = arith.constant 0 : index
    %6 = vector.load %arg4[%5, %c0_4, %c0_5] : memref<3x128x128xf32, #tpu.memory_space<vmem>>, vector<1x128x128xf32>
    %7 = vector.shape_cast %6 : vector<1x128x128xf32> to vector<128x128xf32>
    %cst = arith.constant dense<0.000000e+00> : vector<8x128xf32>
    %8 = tpu.matmul %4, %7, %cst {dimension_numbers = #tpu.dot_dimension_numbers<[1], [0], [0], [1], [0, 0, 1, 1], [], []>} : vector<8x128xf32>, vector<128x128xf32>, vector<8x128xf32> -> vector<8x128xf32>
    %9 = arith.index_cast %arg1 : i32 to index
    %c0_6 = arith.constant 0 : index
    %c0_7 = arith.constant 0 : index
    %10 = vector.load %arg5[%9, %c0_6, %c0_7] : memref<3x1x128xf32, #tpu.memory_space<vmem>>, vector<1x1x128xf32>
    %11 = vector.shape_cast %10 : vector<1x1x128xf32> to vector<1x128xf32>
    %12 = vector.broadcast %11 : vector<1x128xf32> to vector<8x128xf32>
    %13 = arith.addf %8, %12 : vector<8x128xf32>
    %cst_8 = arith.constant 0.000000e+00 : f32
    %14 = vector.broadcast %cst_8 : f32 to vector<8x128xf32>
    %15 = arith.maximumf %13, %14 : vector<8x128xf32>
    %16 = arith.index_cast %arg1 : i32 to index
    %c0_9 = arith.constant 0 : index
    %c0_10 = arith.constant 0 : index
    %17 = vector.load %arg6[%16, %c0_9, %c0_10] : memref<3x128x128xf32, #tpu.memory_space<vmem>>, vector<1x128x128xf32>
    %18 = vector.shape_cast %17 : vector<1x128x128xf32> to vector<128x128xf32>
    %cst_11 = arith.constant dense<0.000000e+00> : vector<8x128xf32>
    %19 = tpu.matmul %15, %18, %cst_11 {dimension_numbers = #tpu.dot_dimension_numbers<[1], [0], [0], [1], [0, 0, 1, 1], [], []>} : vector<8x128xf32>, vector<128x128xf32>, vector<8x128xf32> -> vector<8x128xf32>
    %20 = arith.index_cast %arg1 : i32 to index
    %c0_12 = arith.constant 0 : index
    %c0_13 = arith.constant 0 : index
    %21 = vector.load %arg7[%20, %c0_12, %c0_13] : memref<3x1x128xf32, #tpu.memory_space<vmem>>, vector<1x1x128xf32>
    %22 = vector.shape_cast %21 : vector<1x1x128xf32> to vector<1x128xf32>
    %23 = vector.broadcast %22 : vector<1x128xf32> to vector<8x128xf32>
    %24 = arith.addf %19, %23 : vector<8x128xf32>
    %25 = arith.addf %3, %24 : vector<8x128xf32>
    %26 = arith.index_cast %arg1 : i32 to index
    %c0_14 = arith.constant 0 : index
    %c0_15 = arith.constant 0 : index
    %27 = vector.load %arg8[%26, %c0_14, %c0_15] : memref<3x128x128xf32, #tpu.memory_space<vmem>>, vector<1x128x128xf32>
    %28 = vector.shape_cast %27 : vector<1x128x128xf32> to vector<128x128xf32>
    %cst_16 = arith.constant dense<0.000000e+00> : vector<8x128xf32>
    %29 = tpu.matmul %25, %28, %cst_16 {dimension_numbers = #tpu.dot_dimension_numbers<[1], [0], [0], [1], [0, 0, 1, 1], [], []>} : vector<8x128xf32>, vector<128x128xf32>, vector<8x128xf32> -> vector<8x128xf32>
    %30 = arith.index_cast %arg1 : i32 to index
    %c0_17 = arith.constant 0 : index
    %c0_18 = arith.constant 0 : index
    %31 = vector.load %arg9[%30, %c0_17, %c0_18] : memref<3x1x128xf32, #tpu.memory_space<vmem>>, vector<1x1x128xf32>
    %32 = vector.shape_cast %31 : vector<1x1x128xf32> to vector<1x128xf32>
    %33 = vector.broadcast %32 : vector<1x128xf32> to vector<8x128xf32>
    %34 = arith.addf %29, %33 : vector<8x128xf32>
    %cst_19 = arith.constant 0.000000e+00 : f32
    %35 = vector.broadcast %cst_19 : f32 to vector<8x128xf32>
    %36 = arith.maximumf %34, %35 : vector<8x128xf32>
    %37 = arith.index_cast %arg1 : i32 to index
    %c0_20 = arith.constant 0 : index
    %c0_21 = arith.constant 0 : index
    %38 = vector.load %arg10[%37, %c0_20, %c0_21] : memref<3x128x128xf32, #tpu.memory_space<vmem>>, vector<1x128x128xf32>
    %39 = vector.shape_cast %38 : vector<1x128x128xf32> to vector<128x128xf32>
    %cst_22 = arith.constant dense<0.000000e+00> : vector<8x128xf32>
    %40 = tpu.matmul %36, %39, %cst_22 {dimension_numbers = #tpu.dot_dimension_numbers<[1], [0], [0], [1], [0, 0, 1, 1], [], []>} : vector<8x128xf32>, vector<128x128xf32>, vector<8x128xf32> -> vector<8x128xf32>
    %41 = arith.index_cast %arg1 : i32 to index
    %c0_23 = arith.constant 0 : index
    %c0_24 = arith.constant 0 : index
    %42 = vector.load %arg11[%41, %c0_23, %c0_24] : memref<3x1x128xf32, #tpu.memory_space<vmem>>, vector<1x1x128xf32>
    %43 = vector.shape_cast %42 : vector<1x1x128xf32> to vector<1x128xf32>
    %44 = vector.broadcast %43 : vector<1x128xf32> to vector<8x128xf32>
    %45 = arith.addf %40, %44 : vector<8x128xf32>
    %46 = arith.addf %4, %45 : vector<8x128xf32>
    %c0_25 = arith.constant 0 : index
    %c0_26 = arith.constant 0 : index
    %47 = vector.load %arg12[%c0_25, %c0_26] : memref<8x128xf32, #tpu.memory_space<vmem>>, vector<8x128xf32>
    tpu.vector_store %arg12[%c0_25, %c0_26], %25 {strides = array<i32>} : memref<8x128xf32, #tpu.memory_space<vmem>>, vector<8x128xf32>,
    %c0_27 = arith.constant 0 : index
    %c0_28 = arith.constant 0 : index
    %48 = vector.load %arg13[%c0_27, %c0_28] : memref<8x128xf32, #tpu.memory_space<vmem>>, vector<8x128xf32>
    tpu.vector_store %arg13[%c0_27, %c0_28], %46 {strides = array<i32>} : memref<8x128xf32, #tpu.memory_space<vmem>>, vector<8x128xf32>,
    return
  }
  func.func @transform_0(%arg0: i32, %arg1: i32) -> (i32, i32) {
    %c0_i32 = arith.constant 0 : i32
    %c0_i32_0 = arith.constant 0 : i32
    return %arg0, %c0_i32 : i32, i32
  }
  func.func @transform_1(%arg0: i32, %arg1: i32) -> (i32, i32) {
    %c0_i32 = arith.constant 0 : i32
    %c0_i32_0 = arith.constant 0 : i32
    return %arg0, %c0_i32 : i32, i32
  }
  func.func @transform_2(%arg0: i32, %arg1: i32) -> (i32, i32, i32) {
    %c0_i32 = arith.constant 0 : i32
    %c0_i32_0 = arith.constant 0 : i32
    %c0_i32_1 = arith.constant 0 : i32
    %c0_i32_2 = arith.constant 0 : i32
    return %c0_i32, %c0_i32_0, %c0_i32_1 : i32, i32, i32
  }
  func.func @transform_3(%arg0: i32, %arg1: i32) -> (i32, i32, i32) {
    %c0_i32 = arith.constant 0 : i32
    %c0_i32_0 = arith.constant 0 : i32
    %c0_i32_1 = arith.constant 0 : i32
    %c0_i32_2 = arith.constant 0 : i32
    return %c0_i32, %c0_i32_0, %c0_i32_1 : i32, i32, i32
  }
  func.func @transform_4(%arg0: i32, %arg1: i32) -> (i32, i32, i32) {
    %c0_i32 = arith.constant 0 : i32
    %c0_i32_0 = arith.constant 0 : i32
    %c0_i32_1 = arith.constant 0 : i32
    %c0_i32_2 = arith.constant 0 : i32
    return %c0_i32, %c0_i32_0, %c0_i32_1 : i32, i32, i32
  }
  func.func @transform_5(%arg0: i32, %arg1: i32) -> (i32, i32, i32) {
    %c0_i32 = arith.constant 0 : i32
    %c0_i32_0 = arith.constant 0 : i32
    %c0_i32_1 = arith.constant 0 : i32
    %c0_i32_2 = arith.constant 0 : i32
    return %c0_i32, %c0_i32_0, %c0_i32_1 : i32, i32, i32
  }
  func.func @transform_6(%arg0: i32, %arg1: i32) -> (i32, i32, i32) {
    %c0_i32 = arith.constant 0 : i32
    %c0_i32_0 = arith.constant 0 : i32
    %c0_i32_1 = arith.constant 0 : i32
    %c0_i32_2 = arith.constant 0 : i32
    return %c0_i32, %c0_i32_0, %c0_i32_1 : i32, i32, i32
  }
  func.func @transform_7(%arg0: i32, %arg1: i32) -> (i32, i32, i32) {
    %c0_i32 = arith.constant 0 : i32
    %c0_i32_0 = arith.constant 0 : i32
    %c0_i32_1 = arith.constant 0 : i32
    %c0_i32_2 = arith.constant 0 : i32
    return %c0_i32, %c0_i32_0, %c0_i32_1 : i32, i32, i32
  }
  func.func @transform_8(%arg0: i32, %arg1: i32) -> (i32, i32, i32) {
    %c0_i32 = arith.constant 0 : i32
    %c0_i32_0 = arith.constant 0 : i32
    %c0_i32_1 = arith.constant 0 : i32
    %c0_i32_2 = arith.constant 0 : i32
    return %c0_i32, %c0_i32_0, %c0_i32_1 : i32, i32, i32
  }
  func.func @transform_9(%arg0: i32, %arg1: i32) -> (i32, i32, i32) {
    %c0_i32 = arith.constant 0 : i32
    %c0_i32_0 = arith.constant 0 : i32
    %c0_i32_1 = arith.constant 0 : i32
    %c0_i32_2 = arith.constant 0 : i32
    return %c0_i32, %c0_i32_0, %c0_i32_1 : i32, i32, i32
  }
  func.func @transform_10(%arg0: i32, %arg1: i32) -> (i32, i32) {
    %c0_i32 = arith.constant 0 : i32
    %c0_i32_0 = arith.constant 0 : i32
    return %arg0, %c0_i32 : i32, i32
  }
  func.func @transform_11(%arg0: i32, %arg1: i32) -> (i32, i32) {
    %c0_i32 = arith.constant 0 : i32
    %c0_i32_0 = arith.constant 0 : i32
    return %arg0, %c0_i32 : i32, i32
  }
}

</mosaic_0001>

<bundles_post_ra>
// kernel: reversible_sequence.1
= control target key start
LH: loop header
LB: loop body
LE: loop exit
PB: predicated region body
PF: predicated region fallthrough
CT: control target
= control target key end

     0   :  { %s1307_s17 = smov 0   ;;  %s1309_s18 = smov 0   ;;  %s1560_s0 = inlined_call_operand.vmem [shape: f32[16,128], index: 0, kind: input, shape index: {}]   ;;  %s1561_s1 = inlined_call_operand.vmem [shape: f32[16,128], index: 1, kind: input, shape index: {}]   ;;  %s1562_s2 = inlined_call_operand.vmem [shape: f32[3,128,128], index: 2, kind: input, shape index: {}]   ;;  %s1563_s3 = inlined_call_operand.vmem [shape: f32[3,1,128], index: 3, kind: input, shape index: {}]   ;;  %s1564_s4 = inlined_call_operand.vmem [shape: f32[3,128,128], index: 4, kind: input, shape index: {}]   ;;  %s1565_s5 = inlined_call_operand.vmem [shape: f32[3,1,128], index: 5, kind: input, shape index: {}]   ;;  %s1566_s6 = inlined_call_operand.vmem [shape: f32[3,128,128], index: 6, kind: input, shape index: {}]   ;;  %s1567_s7 = inlined_call_operand.vmem [shape: f32[3,1,128], index: 7, kind: input, shape index: {}]   ;;  %s1568_s8 = inlined_call_operand.vmem [shape: f32[3,128,128], index: 8, kind: input, shape index: {}]   ;;  %s1569_s9 = inlined_call_operand.vmem [shape: f32[3,1,128], index: 9, kind: input, shape index: {}]   ;;  %s1570_s10 = inlined_call_operand.vmem [shape: f32[16,128], index: 10, kind: output, shape index: {0}]   ;;  %s1571_s11 = inlined_call_operand.vmem [shape: f32[16,128], index: 11, kind: output, shape index: {1}]  }
   0x1   :  { %s1311_s19 = smov 0   ;;  %s1313_s20 = smov 0  }
   0x2   :  { %s1315_s21 = smov 0  }
   0x3 LB: > { %s31_s22 = sadd.s32 1, %s1235_s19  ;;  %s34_s23 = sadd.s32 1, %s1239_s20  ;;  %s1243_s21 = sphi %s1315_s21, %s22_s21   ;;  %s1239_s20 = sphi %s1313_s20, %s1577_s20   ;;  %s1235_s19 = sphi %s1311_s19, %s1576_s19   ;;  %s1231_s18 = sphi %s1309_s18, %s1575_s18   ;;  %s1227_s17 = sphi %s1307_s17, %s1574_s17  }
   0x4   : > { %p32_p0 = scmp.ge.s32.totalorder %s31_s22, 3  ;;  %p942_p1 = scmp.ge.s32.totalorder %s1243_s21, 1 }
   0x5   : > { %p360_p2 = scmp.lt.s32.totalorder %s1243_s21, 7 }
   0x6   : > { %s1579_s22 = smov (%p32_p0, %s31_s22), 0  ;;  %s1581_s23 = smov (!%p32_p0, %s34_s23), %s1239_s20 }
   0x7   : > { %p361_p3 = pnand %p942_p1, %p360_p2  ;;  %p36_p4 = scmp.ge.s32.totalorder %s1581_s23, 2 }
   0x8   : > { %p406_p5 = scmp.lt.s32.totalorder (!%p361_p3), %s1231_s18, 1  ;;  %p947_p6 = scmp.ne.s32.totalorder (!%p361_p3), %s1227_s17, 0 }
   0x9   : > { %s1583_s23 = smov (%p36_p4, %s1581_s23), 0  ;;  %364 = sbr.rel (%p361_p3) target bundleno = 845 (0x34d), region = 60 }
   0xa   : > { %1572 = sst [smem:[#allocation2_spill]] %s1583_s23 }
   0xe   : > { %s1585_s18 = smov (!%p406_p5, %s1231_s18), 1  ;;  %425 = sbr.rel (%p947_p6) target bundleno = 22 (0x16), region = 64 }
   0xf   : > { %s943_s24 = sshll.u32 %s1585_s18, 3 }
  0x10   : > { %s409_s27 = scalar_lea.vmem %s1560_s0, %s943_s24  ;;  %s413_s30 = scalar_lea.vmem %s1561_s1, %s943_s24 }
  0x11   : > { %s1348_s14 = scalar_lea.vmem %s1570_s10, %s943_s24  ;;  %s1353_s23 = scalar_lea.vmem %s1571_s11, %s943_s24 }
  0x13   : > { %v426_v0 = vld [vmem:[%s409_s27] sm:$0xff] }
  0x14   : > { %v428_v1 = vld [vmem:[%s413_s30] sm:$0xff]  ;;  %427 = vst [vmem:[%s1348_s14] sm:$0xff] %v426_v0 }
  0x15   : > { %429 = vst [vmem:[%s1353_s23] sm:$0xff] %v428_v1 }
  0x16 PF: > { %s1359_s18 = sshll.u32 %s1227_s17, 7  ;;  %v1245_v2 = vmov 0.0   ;;  %vm1246_vm0 = vmmov 0   ;;  %s450_s24 = scalar_lea.vmem %s1563_s3, %s1227_s17 }
  0x17   : > { %1023 = vmatprep.subr.mxu0 %v1245_v2  ;;  %s1366_s26 = scalar_lea.vmem %s1562_s2, %s1359_s18  ;;  %1055 = vmatprep.mubr.msk.f32.mxu0 %vm1246_vm0, %v1245_v2  ;;  %s1381_s29 = scalar_lea.vmem %s1564_s4, %s1359_s18  ;;  %v949_v49 = vld [vmem:[%s450_s24] ss:$0 sm:$0xff] }
  0x18   : > { %v449_v3 = vld [vmem:[%s1366_s26 + $0x78] sm:$0xff]  ;;  %v448_v4 = vld [vmem:[%s1366_s26 + $0x70] sm:$0xff]  ;;  %1058 = vmatprep.subr.mxu1 %v1245_v2  ;;  %1090 = vmatprep.mubr.msk.f32.mxu1 %vm1246_vm0, %v1245_v2  ;;  %v447_v5 = vld [vmem:[%s1366_s26 + $0x68] sm:$0xff]  ;;  %s1452_s13 = scalar_lea.vmem %s1566_s6, %s1359_s18  ;;  %s1496_s27 = scalar_lea.vmem %s1568_s8, %s1359_s18 }
  0x19   : > { %1024 = vmatpush3.msra.mxu0 %v449_v3  ;;  %v446_v6 = vld [vmem:[%s1366_s26 + $0x60] sm:$0xff]  ;;  %v545_v7 = vld [vmem:[%s1381_s29 + $0x78] sm:$0xff]  ;;  %v544_v8 = vld [vmem:[%s1381_s29 + $0x70] sm:$0xff]  ;;  %s738_s16 = scalar_lea.vmem %s1569_s9, %s1227_s17 }
  0x1a   : > { %1025 = vmatprep.subr.mxu0 %v1245_v2  ;;  %v445_v9 = vld [vmem:[%s1366_s26 + $0x58] sm:$0xff]  ;;  %1059 = vmatpush3.msra.mxu1 %v545_v7  ;;  %v543_v10 = vld [vmem:[%s1381_s29 + $0x68] sm:$0xff]  ;;  %v444_v11 = vld [vmem:[%s1366_s26 + $0x50] sm:$0xff] }
  0x1b   : > { %1026 = vmatpush3.msra.mxu0 %v448_v4  ;;  %1060 = vmatprep.subr.mxu1 %v1245_v2  ;;  %v542_v12 = vld [vmem:[%s1381_s29 + $0x60] sm:$0xff]  ;;  %v443_v13 = vld [vmem:[%s1366_s26 + $0x48] sm:$0xff]  ;;  %v541_v14 = vld [vmem:[%s1381_s29 + $0x58] sm:$0xff] }
  0x1c   : > { %1027 = vmatprep.subr.mxu0 %v1245_v2  ;;  %1061 = vmatpush3.msra.mxu1 %v544_v8  ;;  %v442_v15 = vld [vmem:[%s1366_s26 + $0x40] sm:$0xff]  ;;  %v540_v16 = vld [vmem:[%s1381_s29 + $0x50] sm:$0xff]  ;;  %v441_v17 = vld [vmem:[%s1366_s26 + $0x38] sm:$0xff] }
  0x1d   : > { %1028 = vmatpush3.msra.mxu0 %v447_v5  ;;  %1062 = vmatprep.subr.mxu1 %v1245_v2  ;;  %v539_v18 = vld [vmem:[%s1381_s29 + $0x48] sm:$0xff]  ;;  %v440_v19 = vld [vmem:[%s1366_s26 + $0x30] sm:$0xff]  ;;  %v538_v20 = vld [vmem:[%s1381_s29 + $0x40] sm:$0xff] }
  0x1e   : > { %1029 = vmatprep.subr.mxu0 %v1245_v2  ;;  %1063 = vmatpush3.msra.mxu1 %v543_v10  ;;  %v439_v21 = vld [vmem:[%s1366_s26 + $0x28] sm:$0xff]  ;;  %v537_v22 = vld [vmem:[%s1381_s29 + $0x38] sm:$0xff]  ;;  %v438_v23 = vld [vmem:[%s1366_s26 + $0x20] sm:$0xff] }
  0x1f   : > { %1030 = vmatpush3.msra.mxu0 %v446_v6  ;;  %1064 = vmatprep.subr.mxu1 %v1245_v2  ;;  %v536_v24 = vld [vmem:[%s1381_s29 + $0x30] sm:$0xff]  ;;  %v437_v25 = vld [vmem:[%s1366_s26 + $0x18] sm:$0xff]  ;;  %v535_v26 = vld [vmem:[%s1381_s29 + $0x28] sm:$0xff] }
  0x20   : > { %1031 = vmatprep.subr.mxu0 %v1245_v2  ;;  %1065 = vmatpush3.msra.mxu1 %v542_v12  ;;  %v436_v27 = vld [vmem:[%s1366_s26 + $0x10] sm:$0xff]  ;;  %v534_v28 = vld [vmem:[%s1381_s29 + $0x20] sm:$0xff]  ;;  %v435_v29 = vld [vmem:[%s1366_s26 + $0x8] sm:$0xff] }
  0x21   : > { %1032 = vmatpush3.msra.mxu0 %v445_v9  ;;  %1066 = vmatprep.subr.mxu1 %v1245_v2  ;;  %v533_v30 = vld [vmem:[%s1381_s29 + $0x18] sm:$0xff]  ;;  %v434_v31 = vld [vmem:[%s1366_s26] sm:$0xff]  ;;  %v532_v33 = vld [vmem:[%s1381_s29 + $0x10] sm:$0xff] }
  0x22   : > { %1033 = vmatprep.subr.mxu0 %v1245_v2  ;;  %1067 = vmatpush3.msra.mxu1 %v541_v14  ;;  %v1434_v32 = vld [vmem:[%s1353_s23] sm:$0xff]  ;;  %v531_v34 = vld [vmem:[%s1381_s29 + $0x8] sm:$0xff]  ;;  %v641_v36 = vld [vmem:[%s1452_s13 + $0x78] sm:$0xff] }
  0x23   : > { %1034 = vmatpush3.msra.mxu0 %v444_v11  ;;  %1068 = vmatprep.subr.mxu1 %v1245_v2  ;;  %v530_v35 = vld [vmem:[%s1381_s29] sm:$0xff]  ;;  %v640_v37 = vld [vmem:[%s1452_s13 + $0x70] sm:$0xff]  ;;  %v639_v38 = vld [vmem:[%s1452_s13 + $0x68] sm:$0xff]  ;;  %s546_s29 = scalar_lea.vmem %s1565_s5, %s1227_s17 }
  0x24   : > { %1035 = vmatprep.subr.mxu0 %v1245_v2  ;;  %1069 = vmatpush3.msra.mxu1 %v540_v16  ;;  %v638_v39 = vld [vmem:[%s1452_s13 + $0x60] sm:$0xff]  ;;  %v637_v40 = vld [vmem:[%s1452_s13 + $0x58] sm:$0xff]  ;;  %v636_v41 = vld [vmem:[%s1452_s13 + $0x50] sm:$0xff] }
  0x25   : > { %1036 = vmatpush3.msra.mxu0 %v443_v13  ;;  %1070 = vmatprep.subr.mxu1 %v1245_v2  ;;  %v635_v42 = vld [vmem:[%s1452_s13 + $0x48] sm:$0xff]  ;;  %v634_v43 = vld [vmem:[%s1452_s13 + $0x40] sm:$0xff]  ;;  %v633_v44 = vld [vmem:[%s1452_s13 + $0x38] sm:$0xff] }
  0x26   : > { %1037 = vmatprep.subr.mxu0 %v1245_v2  ;;  %1071 = vmatpush3.msra.mxu1 %v539_v18  ;;  %v632_v45 = vld [vmem:[%s1452_s13 + $0x30] sm:$0xff]  ;;  %v631_v46 = vld [vmem:[%s1452_s13 + $0x28] sm:$0xff]  ;;  %v630_v47 = vld [vmem:[%s1452_s13 + $0x20] sm:$0xff] }
  0x27   : > { %1038 = vmatpush3.msra.mxu0 %v442_v15  ;;  %1072 = vmatprep.subr.mxu1 %v1245_v2  ;;  %v629_v48 = vld [vmem:[%s1452_s13 + $0x18] sm:$0xff]  ;;  %v628_v54 = vld [vmem:[%s1452_s13 + $0x10] sm:$0xff]  ;;  %v627_v55 = vld [vmem:[%s1452_s13 + $0x8] sm:$0xff] }
  0x28   : > { %1039 = vmatprep.subr.mxu0 %v1245_v2  ;;  %1073 = vmatpush3.msra.mxu1 %v538_v20  ;;  %v626_v56 = vld [vmem:[%s1452_s13] sm:$0xff]  ;;  %v737_v57 = vld [vmem:[%s1496_s27 + $0x78] sm:$0xff]  ;;  %v736_v58 = vld [vmem:[%s1496_s27 + $0x70] sm:$0xff]  ;;  %s642_s13 = scalar_lea.vmem %s1567_s7, %s1227_s17 }
  0x29   : > { %1040 = vmatpush3.msra.mxu0 %v441_v17  ;;  %1074 = vmatprep.subr.mxu1 %v1245_v2  ;;  %v735_v59 = vld [vmem:[%s1496_s27 + $0x68] sm:$0xff]  ;;  %v734_v60 = vld [vmem:[%s1496_s27 + $0x60] sm:$0xff]  ;;  %v733_v61 = vld [vmem:[%s1496_s27 + $0x58] sm:$0xff] }
  0x2a   : > { %1041 = vmatprep.subr.mxu0 %v1245_v2  ;;  %1075 = vmatpush3.msra.mxu1 %v537_v22  ;;  %v732_v62 = vld [vmem:[%s1496_s27 + $0x50] sm:$0xff]  ;;  %v731_v63 = vld [vmem:[%s1496_s27 + $0x48] sm:$0xff]  ;;  %v730_v0 = vld [vmem:[%s1496_s27 + $0x40] sm:$0xff] }
  0x2b   : > { %1042 = vmatpush3.msra.mxu0 %v440_v19  ;;  %1076 = vmatprep.subr.mxu1 %v1245_v2  ;;  %v729_v1 = vld [vmem:[%s1496_s27 + $0x38] sm:$0xff]  ;;  %v728_v3 = vld [vmem:[%s1496_s27 + $0x30] sm:$0xff]  ;;  %v727_v4 = vld [vmem:[%s1496_s27 + $0x28] sm:$0xff] }
  0x2c   : > { %1043 = vmatprep.subr.mxu0 %v1245_v2  ;;  %1077 = vmatpush3.msra.mxu1 %v536_v24  ;;  %v726_v5 = vld [vmem:[%s1496_s27 + $0x20] sm:$0xff]  ;;  %v725_v6 = vld [vmem:[%s1496_s27 + $0x18] sm:$0xff]  ;;  %v724_v13 = vld [vmem:[%s1496_s27 + $0x10] sm:$0xff] }
  0x2d   : > { %1044 = vmatpush3.msra.mxu0 %v439_v21  ;;  %1078 = vmatprep.subr.mxu1 %v1245_v2  ;;  %v950_v7 = vld [vmem:[%s546_s29] ss:$0 sm:$0xff]  ;;  %v723_v14 = vld [vmem:[%s1496_s27 + $0x8] sm:$0xff] }
  0x2e   : > { %1045 = vmatprep.subr.mxu0 %v1245_v2  ;;  %1079 = vmatpush3.msra.mxu1 %v535_v26  ;;  %v430_v8 = vld [vmem:[%s1348_s14] sm:$0xff] }
  0x2f   : > { %1046 = vmatpush3.msra.mxu0 %v438_v23  ;;  %1080 = vmatprep.subr.mxu1 %v1245_v2  ;;  %v722_v15 = vld [vmem:[%s1496_s27] sm:$0xff] }
  0x30   : > { %1047 = vmatprep.subr.mxu0 %v1245_v2  ;;  %1081 = vmatpush3.msra.mxu1 %v534_v28  ;;  %v951_v16 = vld [vmem:[%s642_s13] ss:$0 sm:$0xff] }
  0x31   : > { %1048 = vmatpush3.msra.mxu0 %v437_v25  ;;  %1082 = vmatprep.subr.mxu1 %v1245_v2  ;;  %v952_v21 = vld [vmem:[%s738_s16] ss:$0 sm:$0xff] }
  0x32   : > { %1049 = vmatprep.subr.mxu0 %v1245_v2  ;;  %1083 = vmatpush3.msra.mxu1 %v533_v30 }
  0x33   : > { %1050 = vmatpush3.msra.mxu0 %v436_v27  ;;  %1084 = vmatprep.subr.mxu1 %v1245_v2 }
  0x34   : > { %1051 = vmatprep.subr.mxu0 %v1245_v2  ;;  %1085 = vmatpush3.msra.mxu1 %v532_v33 }
  0x35   : > { %1052 = vmatpush3.msra.mxu0 %v435_v29  ;;  %1086 = vmatprep.subr.mxu1 %v1245_v2 }
  0x36   : > { %1053 = vmatprep.subr.mxu0 %v1245_v2  ;;  %1087 = vmatpush3.msra.mxu1 %v531_v34 }
  0x37   : > { %1054 = vmatpush3.msra.mxu0 %v434_v31  ;;  %1088 = vmatprep.subr.mxu1 %v1245_v2 }
  0x38   : > { %1056 = vmatmul.mubr.f32.vlgmr.msra.gmra.mxu0 %v1434_v32  ;;  %1093 = vmatprep.subr.mxu0 %v1245_v2 }
  0x39   : > { %1125 = vmatprep.mubr.msk.f32.mxu0 %vm1246_vm0, %v1245_v2  ;;  %1089 = vmatpush3.msra.mxu1 %v530_v35 }
  0x3a   : > { %1128 = vmatprep.subr.mxu1 %v1245_v2  ;;  %1094 = vmatpush3.msra.mxu0 %v641_v36 }
  0x3b   : > { %1095 = vmatprep.subr.mxu0 %v1245_v2 }
  0x3c   : > { %1096 = vmatpush3.msra.mxu0 %v640_v37 }
  0x3d   : > { %1097 = vmatprep.subr.mxu0 %v1245_v2 }
  0x3e   : > { %1098 = vmatpush3.msra.mxu0 %v639_v38 }
  0x3f   : > { %1099 = vmatprep.subr.mxu0 %v1245_v2 }
  0x40   : > { %1100 = vmatpush3.msra.mxu0 %v638_v39 }
  0x41   : > { %1101 = vmatprep.subr.mxu0 %v1245_v2 }
  0x42   : > { %1102 = vmatpush3.msra.mxu0 %v637_v40 }
  0x43   : > { %1103 = vmatprep.subr.mxu0 %v1245_v2 }
  0x44   : > { %1104 = vmatpush3.msra.mxu0 %v636_v41 }
  0x45   : > { %1105 = vmatprep.subr.mxu0 %v1245_v2 }
  0x46   : > { %1106 = vmatpush3.msra.mxu0 %v635_v42 }
  0x47   : > { %1107 = vmatprep.subr.mxu0 %v1245_v2 }
  0x48   : > { %1108 = vmatpush3.msra.mxu0 %v634_v43 }
  0x49   : > { %1109 = vmatprep.subr.mxu0 %v1245_v2 }
  0x4a   : > { %1110 = vmatpush3.msra.mxu0 %v633_v44 }
  0x4b   : > { %1111 = vmatprep.subr.mxu0 %v1245_v2 }
  0x4c   : > { %1112 = vmatpush3.msra.mxu0 %v632_v45 }
  0x4d   : > { %1113 = vmatprep.subr.mxu0 %v1245_v2 }
  0x4e   : > { %1114 = vmatpush3.msra.mxu0 %v631_v46 }
  0x4f   : > { %1115 = vmatprep.subr.mxu0 %v1245_v2 }
  0x50   : > { %1116 = vmatpush3.msra.mxu0 %v630_v47 }
  0x51   : > { %1117 = vmatprep.subr.mxu0 %v1245_v2 }
  0x52   : > { %1118 = vmatpush3.msra.mxu0 %v629_v48 }
  0x53   : > { %1119 = vmatprep.subr.mxu0 %v1245_v2 }
  0x54   : > { %1120 = vmatpush3.msra.mxu0 %v628_v54 }
  0x55   : > { %1121 = vmatprep.subr.mxu0 %v1245_v2 }
  0x56   : > { %1122 = vmatpush3.msra.mxu0 %v627_v55 }
  0x57   : > { %1123 = vmatprep.subr.mxu0 %v1245_v2 }
  0x58   : > { %1124 = vmatpush3.msra.mxu0 %v626_v56 }
  0xf8   : > { %v524_v50 = vpop.f32.mrf.mxu0 }
  0xf9   : > { %v525_v51 = vadd.f32 %v949_v49, %v524_v50 }
  0xfa   : > { %v1057_v52 = vpop.f32.mrf.mxu0 }
  0xfb   : > { %v528_v53 = vmax.f32 %v525_v51, 0.0 }
  0xfd   : > { %1091 = vmatmul.mubr.f32.vlgmr.msra.gmra.mxu1 %v528_v53 }
  0xfe   : > { %1160 = vmatprep.mubr.msk.f32.mxu1 %vm1246_vm0, %v1245_v2  ;;  %1129 = vmatpush3.msra.mxu1 %v737_v57 }
  0xff   : > { %1130 = vmatprep.subr.mxu1 %v1245_v2 }
 0x100   : > { %1131 = vmatpush3.msra.mxu1 %v736_v58 }
 0x101   : > { %1132 = vmatprep.subr.mxu1 %v1245_v2 }
 0x102   : > { %1133 = vmatpush3.msra.mxu1 %v735_v59 }
 0x103   : > { %1134 = vmatprep.subr.mxu1 %v1245_v2 }
 0x104   : > { %1135 = vmatpush3.msra.mxu1 %v734_v60 }
 0x105   : > { %1136 = vmatprep.subr.mxu1 %v1245_v2 }
 0x106   : > { %1137 = vmatpush3.msra.mxu1 %v733_v61 }
 0x107   : > { %1138 = vmatprep.subr.mxu1 %v1245_v2 }
 0x108   : > { %1139 = vmatpush3.msra.mxu1 %v732_v62 }
 0x109   : > { %1140 = vmatprep.subr.mxu1 %v1245_v2 }
 0x10a   : > { %1141 = vmatpush3.msra.mxu1 %v731_v63 }
 0x10b   : > { %1142 = vmatprep.subr.mxu1 %v1245_v2 }
 0x10c   : > { %1143 = vmatpush3.msra.mxu1 %v730_v0 }
 0x10d   : > { %1144 = vmatprep.subr.mxu1 %v1245_v2 }
 0x10e   : > { %1145 = vmatpush3.msra.mxu1 %v729_v1 }
 0x10f   : > { %1146 = vmatprep.subr.mxu1 %v1245_v2 }
 0x110   : > { %1147 = vmatpush3.msra.mxu1 %v728_v3 }
 0x111   : > { %1148 = vmatprep.subr.mxu1 %v1245_v2 }
 0x112   : > { %1149 = vmatpush3.msra.mxu1 %v727_v4 }
 0x113   : > { %1150 = vmatprep.subr.mxu1 %v1245_v2 }
 0x114   : > { %1151 = vmatpush3.msra.mxu1 %v726_v5 }
 0x115   : > { %1152 = vmatprep.subr.mxu1 %v1245_v2 }
 0x116   : > { %1153 = vmatpush3.msra.mxu1 %v725_v6 }
 0x117   : > { %1154 = vmatprep.subr.mxu1 %v1245_v2 }
 0x118   : > { %1155 = vmatpush3.msra.mxu1 %v724_v13 }
 0x119   : > { %1156 = vmatprep.subr.mxu1 %v1245_v2 }
 0x11a   : > { %1157 = vmatpush3.msra.mxu1 %v723_v14 }
 0x11b   : > { %1158 = vmatprep.subr.mxu1 %v1245_v2 }
 0x11c   : > { %1159 = vmatpush3.msra.mxu1 %v722_v15 }
 0x1bd   : > { %v620_v9 = vpop.f32.mrf.mxu1 }
 0x1be   : > { %v621_v10 = vadd.f32 %v950_v7, %v620_v9 }
 0x1bf   : > { %v1092_v11 = vpop.f32.mrf.mxu1 }
 0x1c0   : > { %v624_v12 = vadd.f32 %v621_v10, %v430_v8 }
 0x1c2   : > { %817 = vst [vmem:[%s1348_s14] sm:$0xff] %v624_v12  ;;  %1126 = vmatmul.mubr.f32.vlgmr.msra.gmra.mxu0 %v624_v12 }
 0x282   : > { %v716_v17 = vpop.f32.mrf.mxu0 }
 0x283   : > { %v717_v18 = vadd.f32 %v951_v16, %v716_v17 }
 0x284   : > { %v1127_v19 = vpop.f32.mrf.mxu0 }
 0x285   : > { %v720_v20 = vmax.f32 %v717_v18, 0.0 }
 0x287   : > { %1161 = vmatmul.mubr.f32.vlgmr.msra.gmra.mxu1 %v720_v20 }
 0x347   : > { %v812_v22 = vpop.f32.mrf.mxu1 }
 0x348   : > { %v813_v2 = vadd.f32 %v952_v21, %v812_v22 }
 0x349   : > { %v1162_v23 = vpop.f32.mrf.mxu1 }
 0x34a   : > { %v816_v24 = vadd.f32 %v813_v2, %v1434_v32 }
 0x34c   : > { %818 = vst [vmem:[%s1353_s23] sm:$0xff] %v816_v24 }
 0x34d PF: > { %s22_s21 = sadd.s32 1, %s1243_s21   ;;  %s1573_s24 = sld [smem:[#allocation2_spill]] }
 0x34e   : > { %p19_p7 = scmp.ge.s32.totalorder %s22_s21, 8   ;;  %s1574_s17 = smov %s1235_s19 }
 0x34f   : > { %s1575_s18 = smov %s1239_s20  ;;  %s1576_s19 = smov %s1579_s22 }
 0x350   :  { %21 = sbr.rel (!%p19_p7) target bundleno = 3 (0x3), region = 117 }
 0x353   : > { %s1577_s20 = smov %s1573_s24 }

</bundles_post_ra>
